<compile_context>
chip_gen: v6e
topology: v6e:2x2x1
jax: 0.10.0
libtpu: 0.0.40
codegen_flags: <defaults>
</compile_context>

<pallas_src>
import functools
import math

import jax
import jax.numpy as jnp
from jax.experimental import pallas as pl
from jax.experimental.pallas import tpu as pltpu


# ---------------------------------------------------------------------------
# helpers
# ---------------------------------------------------------------------------
_LANE = 128
_TARGET_BLOCK_BYTES = 2 << 20  # ~2 MiB per data block (memory-bound sweet spot)


def _round_up(x, m):
    return (x + m - 1) // m * m


def _sublane(dtype):
    # sublane packing multiple: 8 rows for 4-byte, 16 for 2-byte, 32 for 1-byte
    return max(8, 32 // jnp.dtype(dtype).itemsize)


def _padded_block_bytes(rows, cols, dtype):
    # VMEM buffers are laid out in (sublane x 128-lane) tiles of the dtype.
    sub = _sublane(dtype)
    return (_round_up(max(rows, 1), sub)
            * _round_up(max(cols, 1), _LANE)
            * jnp.dtype(dtype).itemsize)


def _vmem_limit(*buffer_bytes):
    total = sum(buffer_bytes) + (2 << 20)            # headroom
    # explicit limit: above v5e's 16 MiB scoped default, well under v7x's 64 MiB
    return int(min(max(total, 8 << 20), 40 << 20))


def _pick_row_tile(n_rows, bytes_per_row, sub):
    """Row tile: sublane multiple, ~2 MiB blocks, >=2 grid steps when possible."""
    budget = max(sub, (_TARGET_BLOCK_BYTES // max(bytes_per_row, 1)) // sub * sub)
    tile = min(budget, _round_up(n_rows, sub))
    if tile >= n_rows:
        if n_rows >= 2 * sub:
            # split into (at least) two steps so both v7x TensorCores get work
            tile = _round_up(-(-n_rows // 2), sub)
        else:
            tile = n_rows                            # full-extent block (always legal)
    return tile


def _pick_lane_tile(n_lanes, bytes_per_lane):
    """Lane tile: multiple of 128 (or full extent), ~2 MiB blocks."""
    budget = max(_LANE,
                 (_TARGET_BLOCK_BYTES // max(bytes_per_lane, 1)) // _LANE * _LANE)
    if budget >= n_lanes:
        return n_lanes                               # full extent — always legal
    return budget                                    # multiple of 128; last block masked


# ---------------------------------------------------------------------------
# kernels
# ---------------------------------------------------------------------------
def _ln_cl_kernel(x_ref, w_ref, b_ref, o_ref, *, eps):
    """channels_last, plain layout: normalize each row of (tile, C)."""
    x = x_ref[...].astype(jnp.float32)                       # (tile, C)
    u = jnp.mean(x, axis=-1, keepdims=True)
    d = x - u
    var = jnp.mean(d * d, axis=-1, keepdims=True)
    y = d * jax.lax.rsqrt(var + eps)
    w = w_ref[...].astype(jnp.float32)                       # (1, C)
    b = b_ref[...].astype(jnp.float32)
    o_ref[...] = (y * w + b).astype(o_ref.dtype)


def _ln_cl_packed_kernel(x_ref, w_ref, b_ref, seg_ref, o_ref, *, eps, inv_c):
    """channels_last, k tokens packed per 128-lane row (C < 128, 128 % C == 0).

    seg_ref is a (128,128) block-diagonal 0/1 matrix; x @ seg gives, per lane,
    the sum of its own C-wide segment (i.e. its token), broadcast back to all
    lanes of that segment.  One MXU matmul per statistic, rows independent.
    """
    x = x_ref[...].astype(jnp.float32)                       # (tile, 128)
    seg = seg_ref[...]                                       # (128, 128) f32
    u = jnp.dot(x, seg, preferred_element_type=jnp.float32) * inv_c
    d = x - u
    var = jnp.dot(d * d, seg, preferred_element_type=jnp.float32) * inv_c
    y = d * jax.lax.rsqrt(var + eps)
    w = w_ref[...].astype(jnp.float32)                       # (1, 128): weight tiled k times
    b = b_ref[...].astype(jnp.float32)
    o_ref[...] = (y * w + b).astype(o_ref.dtype)


def _ln_cf_kernel(x_ref, w_ref, b_ref, o_ref, *, eps):
    """channels_first, (B,C,H*W) layout: normalize over axis 0 (C) of (C, Lt)."""
    x = x_ref[...].astype(jnp.float32)                       # (C, Lt)
    u = jnp.mean(x, axis=0, keepdims=True)
    d = x - u
    var = jnp.mean(d * d, axis=0, keepdims=True)
    y = d * jax.lax.rsqrt(var + eps)
    w = w_ref[...].astype(jnp.float32)                       # (C, 1)
    b = b_ref[...].astype(jnp.float32)
    o_ref[...] = (w * y + b).astype(o_ref.dtype)


# ---------------------------------------------------------------------------
# channels_last wrapper
# ---------------------------------------------------------------------------
def layernorm_channels_last(x, weight, bias, *, eps=1e-6):
    """LayerNorm over the last axis of x (any leading shape)."""
    orig_shape = x.shape
    C = orig_shape[-1]
    N = math.prod(orig_shape[:-1]) if len(orig_shape) > 1 else 1
    x2 = x.reshape(N, C)
    sub = _sublane(x.dtype)
    itemsize = jnp.dtype(x.dtype).itemsize

    # Packed lane-dense path: free reshape (N, C) -> (N/k, k*C) with k*C = 128.
    if C < _LANE and _LANE % C == 0 and N % (_LANE // C) == 0 and N >= (_LANE // C):
        k = _LANE // C
        Np = N // k
        xp = x2.reshape(Np, _LANE)
        w_t = jnp.tile(weight.reshape(-1), k).reshape(1, _LANE)
        b_t = jnp.tile(bias.reshape(-1), k).reshape(1, _LANE)
        lane = jnp.arange(_LANE)
        seg = (lane[:, None] // C == lane[None, :] // C).astype(jnp.float32)

        tile = _pick_row_tile(Np, _LANE * itemsize, sub)
        grid = (pl.cdiv(Np, tile),)
        blk = _padded_block_bytes(tile, _LANE, x.dtype)
        par = _padded_block_bytes(1, _LANE, w_t.dtype)
        segb = _padded_block_bytes(_LANE, _LANE, jnp.float32)
        vmem = _vmem_limit(4 * blk, 4 * par, 2 * segb)

        kernel = functools.partial(_ln_cl_packed_kernel, eps=eps, inv_c=1.0 / C)
        out = pl.pallas_call(
            kernel,
            out_shape=jax.ShapeDtypeStruct((Np, _LANE), x.dtype),
            grid_spec=pltpu.PrefetchScalarGridSpec(
                num_scalar_prefetch=0,
                grid=grid,
                in_specs=[
                    pl.BlockSpec((tile, _LANE), lambda i: (i, 0)),
                    pl.BlockSpec((1, _LANE), lambda i: (0, 0)),
                    pl.BlockSpec((1, _LANE), lambda i: (0, 0)),
                    pl.BlockSpec((_LANE, _LANE), lambda i: (0, 0)),
                ],
                out_specs=pl.BlockSpec((tile, _LANE), lambda i: (i, 0)),
            ),
            compiler_params=pltpu.CompilerParams(
                dimension_semantics=("parallel",),
                vmem_limit_bytes=vmem,
            ),
        )(xp, w_t, b_t, seg)
        return out.reshape(orig_shape)

    # Plain path: lane dim is C.  Already lane-dense for production C >= 128;
    # for small/odd C that the packed path can't take, masked stores are
    # accepted rather than paying an extra HBM pass to pad C.
    tile = _pick_row_tile(N, C * itemsize, sub)
    grid = (pl.cdiv(N, tile),)
    blk = _padded_block_bytes(tile, C, x.dtype)
    par = _padded_block_bytes(1, C, weight.dtype)
    vmem = _vmem_limit(4 * blk, 4 * par)

    kernel = functools.partial(_ln_cl_kernel, eps=eps)
    out = pl.pallas_call(
        kernel,
        out_shape=jax.ShapeDtypeStruct((N, C), x.dtype),
        grid_spec=pltpu.PrefetchScalarGridSpec(
            num_scalar_prefetch=0,
            grid=grid,
            in_specs=[
                pl.BlockSpec((tile, C), lambda i: (i, 0)),
                pl.BlockSpec((1, C), lambda i: (0, 0)),
                pl.BlockSpec((1, C), lambda i: (0, 0)),
            ],
            out_specs=pl.BlockSpec((tile, C), lambda i: (i, 0)),
        ),
        compiler_params=pltpu.CompilerParams(
            dimension_semantics=("parallel",),
            vmem_limit_bytes=vmem,
        ),
    )(x2, weight.reshape(1, C), bias.reshape(1, C))
    return out.reshape(orig_shape)


# ---------------------------------------------------------------------------
# channels_first wrapper: (B, C, H, W) normalized over C, computed natively
# in a flattened (B, C, H*W) view (contiguous merge — no transpose, no copy).
# ---------------------------------------------------------------------------
def layernorm_channels_first(x, weight, bias, *, eps=1e-6):
    B, C, H, W = x.shape
    L = H * W
    x3 = x.reshape(B, C, L)

    Lt = _pick_lane_tile(L, _round_up(C, _sublane(x.dtype)) * jnp.dtype(x.dtype).itemsize)
    grid = (B, pl.cdiv(L, Lt))

    blk = _padded_block_bytes(C, Lt, x.dtype)
    par = _padded_block_bytes(C, 1, weight.dtype)
    vmem = _vmem_limit(4 * blk, 4 * par)

    kernel = functools.partial(_ln_cf_kernel, eps=eps)
    out = pl.pallas_call(
        kernel,
        out_shape=jax.ShapeDtypeStruct((B, C, L), x.dtype),
        grid_spec=pltpu.PrefetchScalarGridSpec(
            num_scalar_prefetch=0,
            grid=grid,
            in_specs=[
                pl.BlockSpec((None, C, Lt), lambda b, j: (b, 0, j)),
                pl.BlockSpec((C, 1), lambda b, j: (0, 0)),
                pl.BlockSpec((C, 1), lambda b, j: (0, 0)),
            ],
            out_specs=pl.BlockSpec((None, C, Lt), lambda b, j: (b, 0, j)),
        ),
        compiler_params=pltpu.CompilerParams(
            dimension_semantics=("parallel", "parallel"),
            vmem_limit_bytes=vmem,
        ),
    )(x3, weight.reshape(C, 1), bias.reshape(C, 1))
    return out.reshape(B, C, H, W)


# ---------------------------------------------------------------------------
# Public entry point mirroring the PyTorch module
# ---------------------------------------------------------------------------
def layer_norm_forward(x, weight, bias, *, eps=1e-6, data_format="channels_last"):
    if data_format == "channels_last":
        return layernorm_channels_last(x, weight, bias, eps=eps)
    elif data_format == "channels_first":
        return layernorm_channels_first(x, weight, bias, eps=eps)
    else:
        raise NotImplementedError(data_format)


# ---------------------------------------------------------------------------
# Pure-JAX reference (mirrors the PyTorch forward exactly)
# ---------------------------------------------------------------------------
def layer_norm_reference(x, weight, bias, *, eps=1e-6, data_format="channels_last"):
    if data_format == "channels_last":
        u = jnp.mean(x, axis=-1, keepdims=True)
        s = jnp.mean((x - u) ** 2, axis=-1, keepdims=True)
        xn = (x - u) / jnp.sqrt(s + eps)
        return xn * weight + bias
    else:  # channels_first
        u = jnp.mean(x, axis=1, keepdims=True)
        s = jnp.mean((x - u) ** 2, axis=1, keepdims=True)
        xn = (x - u) / jnp.sqrt(s + eps)
        return weight[None, :, None, None] * xn + bias[None, :, None, None]


if __name__ == "__main__":
    key = jax.random.PRNGKey(0)
    k1, k2, k3, k4, k5, k6, k7, k8 = jax.random.split(key, 8)

    C = 32
    weight = 1.0 + 0.1 * jax.random.normal(k1, (C,), jnp.float32)
    bias = 0.1 * jax.random.normal(k2, (C,), jnp.float32)

    # channels_last, C=32 -> packed lane-dense path (4 tokens per 128-lane row)
    x_cl = jax.random.normal(k3, (2, 16, 16, C), jnp.float32)
    out_cl = jax.block_until_ready(
        layer_norm_forward(x_cl, weight, bias, data_format="channels_last"))
    ref_cl = layer_norm_reference(x_cl, weight, bias, data_format="channels_last")
    assert out_cl.shape == x_cl.shape
    if not jnp.allclose(out_cl, ref_cl, atol=1e-4, rtol=1e-4):
        raise AssertionError("channels_last LayerNorm mismatch vs reference")

    # ragged token count -> plain path with cdiv grid / masked final block
    x_rag = jax.random.normal(k4, (3, 5, 7, C), jnp.float32)
    out_rag = jax.block_until_ready(
        layer_norm_forward(x_rag, weight, bias, data_format="channels_last"))
    ref_rag = layer_norm_reference(x_rag, weight, bias, data_format="channels_last")
    if not jnp.allclose(out_rag, ref_rag, atol=1e-4, rtol=1e-4):
        raise AssertionError("ragged channels_last LayerNorm mismatch vs reference")

    # C=128 -> plain path, already lane-dense (production case)
    w128 = 1.0 + 0.1 * jax.random.normal(k5, (128,), jnp.float32)
    b128 = 0.1 * jax.random.normal(k6, (128,), jnp.float32)
    x128 = jax.random.normal(k7, (2, 8, 8, 128), jnp.float32)
    out128 = jax.block_until_ready(
        layer_norm_forward(x128, w128, b128, data_format="channels_last"))
    ref128 = layer_norm_reference(x128, w128, b128, data_format="channels_last")
    if not jnp.allclose(out128, ref128, atol=1e-4, rtol=1e-4):
        raise AssertionError("C=128 channels_last LayerNorm mismatch vs reference")

    # channels_first: (B, C, H, W), computed natively on the (B, C, H*W) view
    x_cf = jax.random.normal(k8, (2, C, 16, 16), jnp.float32)
    out_cf = jax.block_until_ready(
        layer_norm_forward(x_cf, weight, bias, data_format="channels_first"))
    ref_cf = layer_norm_reference(x_cf, weight, bias, data_format="channels_first")
    assert out_cf.shape == x_cf.shape
    if not jnp.allclose(out_cf, ref_cf, atol=1e-4, rtol=1e-4):
        raise AssertionError("channels_first LayerNorm mismatch vs reference")

    print("KERNEL_OK")
</pallas_src>

<mosaic_0001>
module attributes {stable_mosaic.version = 11 : i64} {
  func.func @_ln_cl_packed_kernel(%arg0: i32, %arg1: memref<64x128xf32, #tpu.memory_space<vmem>>, %arg2: memref<1x128xf32, #tpu.memory_space<vmem>>, %arg3: memref<1x128xf32, #tpu.memory_space<vmem>>, %arg4: memref<128x128xf32, #tpu.memory_space<vmem>>, %arg5: memref<64x128xf32, #tpu.memory_space<vmem>>) attributes {dimension_semantics = [#tpu.dimension_semantics<parallel>], iteration_bounds = array<i64: 2>, scalar_prefetch = 0 : i64, scratch_operands = 0 : i64, tpu.core_type = #tpu.core_type<tc>, window_params = [{transform_indices = @transform_0, window_bounds = array<i64: 64, 128>}, {pipeline_mode = #tpu.pipeline_mode<synchronous>, transform_indices = @transform_1, window_bounds = array<i64: 1, 128>}, {pipeline_mode = #tpu.pipeline_mode<synchronous>, transform_indices = @transform_2, window_bounds = array<i64: 1, 128>}, {pipeline_mode = #tpu.pipeline_mode<synchronous>, transform_indices = @transform_3, window_bounds = array<i64: 128, 128>}, {transform_indices = @transform_4, window_bounds = array<i64: 64, 128>}]} {
    %c0 = arith.constant 0 : index
    %c0_0 = arith.constant 0 : index
    %0 = vector.load %arg1[%c0, %c0_0] : memref<64x128xf32, #tpu.memory_space<vmem>>, vector<64x128xf32>
    %c0_1 = arith.constant 0 : index
    %c0_2 = arith.constant 0 : index
    %1 = vector.load %arg4[%c0_1, %c0_2] : memref<128x128xf32, #tpu.memory_space<vmem>>, vector<128x128xf32>
    %cst = arith.constant dense<0.000000e+00> : vector<64x128xf32>
    %2 = tpu.matmul %0, %1, %cst {dimension_numbers = #tpu.dot_dimension_numbers<[1], [0], [0], [1], [0, 0, 1, 1], [], []>} : vector<64x128xf32>, vector<128x128xf32>, vector<64x128xf32> -> vector<64x128xf32>
    %cst_3 = arith.constant 3.125000e-02 : f32
    %3 = vector.broadcast %cst_3 : f32 to vector<64x128xf32>
    %4 = arith.mulf %2, %3 : vector<64x128xf32>
    %5 = arith.subf %0, %4 : vector<64x128xf32>
    %6 = arith.mulf %5, %5 : vector<64x128xf32>
    %cst_4 = arith.constant dense<0.000000e+00> : vector<64x128xf32>
    %7 = tpu.matmul %6, %1, %cst_4 {dimension_numbers = #tpu.dot_dimension_numbers<[1], [0], [0], [1], [0, 0, 1, 1], [], []>} : vector<64x128xf32>, vector<128x128xf32>, vector<64x128xf32> -> vector<64x128xf32>
    %cst_5 = arith.constant 3.125000e-02 : f32
    %8 = vector.broadcast %cst_5 : f32 to vector<64x128xf32>
    %9 = arith.mulf %7, %8 : vector<64x128xf32>
    %cst_6 = arith.constant 9.99999997E-7 : f32
    %10 = vector.broadcast %cst_6 : f32 to vector<64x128xf32>
    %11 = arith.addf %9, %10 : vector<64x128xf32>
    %12 = math.rsqrt %11 : vector<64x128xf32>
    %13 = arith.mulf %5, %12 : vector<64x128xf32>
    %c0_7 = arith.constant 0 : index
    %c0_8 = arith.constant 0 : index
    %14 = vector.load %arg2[%c0_7, %c0_8] : memref<1x128xf32, #tpu.memory_space<vmem>>, vector<1x128xf32>
    %c0_9 = arith.constant 0 : index
    %c0_10 = arith.constant 0 : index
    %15 = vector.load %arg3[%c0_9, %c0_10] : memref<1x128xf32, #tpu.memory_space<vmem>>, vector<1x128xf32>
    %16 = vector.broadcast %14 : vector<1x128xf32> to vector<64x128xf32>
    %17 = arith.mulf %13, %16 : vector<64x128xf32>
    %18 = vector.broadcast %15 : vector<1x128xf32> to vector<64x128xf32>
    %19 = arith.addf %17, %18 : vector<64x128xf32>
    %c0_11 = arith.constant 0 : index
    %c0_12 = arith.constant 0 : index
    %20 = vector.load %arg5[%c0_11, %c0_12] : memref<64x128xf32, #tpu.memory_space<vmem>>, vector<64x128xf32>
    tpu.vector_store %arg5[%c0_11, %c0_12], %19 {strides = array<i32>} : memref<64x128xf32, #tpu.memory_space<vmem>>, vector<64x128xf32>,
    return
  }
  func.func @transform_0(%arg0: i32) -> (i32, i32) {
    %c0_i32 = arith.constant 0 : i32
    %c0_i32_0 = arith.constant 0 : i32
    return %arg0, %c0_i32 : i32, i32
  }
  func.func @transform_1(%arg0: i32) -> (i32, i32) {
    %c0_i32 = arith.constant 0 : i32
    %c0_i32_0 = arith.constant 0 : i32
    %c0_i32_1 = arith.constant 0 : i32
    return %c0_i32, %c0_i32_0 : i32, i32
  }
  func.func @transform_2(%arg0: i32) -> (i32, i32) {
    %c0_i32 = arith.constant 0 : i32
    %c0_i32_0 = arith.constant 0 : i32
    %c0_i32_1 = arith.constant 0 : i32
    return %c0_i32, %c0_i32_0 : i32, i32
  }
  func.func @transform_3(%arg0: i32) -> (i32, i32) {
    %c0_i32 = arith.constant 0 : i32
    %c0_i32_0 = arith.constant 0 : i32
    %c0_i32_1 = arith.constant 0 : i32
    return %c0_i32, %c0_i32_0 : i32, i32
  }
  func.func @transform_4(%arg0: i32) -> (i32, i32) {
    %c0_i32 = arith.constant 0 : i32
    %c0_i32_0 = arith.constant 0 : i32
    return %arg0, %c0_i32 : i32, i32
  }
}

</mosaic_0001>

<bundles_post_ra>
// kernel: tpu_custom_call.1
= control target key start
LH: loop header
LB: loop body
LE: loop exit
PB: predicated region body
PF: predicated region fallthrough
CT: control target
= control target key end

     0   :  { %9 = vsyncpa [#allocation3], 0  ;;  %s1305_s0 = inlined_call_operand.hbm [shape: f32[128,128], index: 0, kind: input, shape index: {}]   ;;  %s1306_s1 = inlined_call_operand.vmem [shape: f32[1,128], index: 1, kind: input, shape index: {}]   ;;  %s1307_s2 = inlined_call_operand.vmem [shape: f32[1,128], index: 2, kind: input, shape index: {}]   ;;  %s1308_s3 = inlined_call_operand.hbm [shape: f32[128,128], index: 3, kind: input, shape index: {}]   ;;  %s1309_s4 = inlined_call_operand.hbm [shape: f32[128,128], index: 4, kind: output, shape index: {}]  }
   0x1   :  { %11 = vsyncpa [#allocation3 + $0x1], 0 }
   0x2   :  { %12 = vsyncpa [#allocation6], 0 }
   0x3   :  { %13 = vsyncpa [#allocation4], 0 }
   0x4   :  { %15 = vsyncpa [#allocation4 + $0x1], 0  ;;  %s1047_s15 = smov 0   ;;  %s1049_s16 = smov 0  }
   0x5   :  { %s1051_s17 = smov 0   ;;  %s1053_s18 = smov 0  }
   0x6 LB: > { %s1068_s19 = sadd.s32 4294967295, %s1013_s18   ;;  %s658_s20 = sadd.s32 4294967294, %s1013_s18   ;;  %s1013_s18 = sphi %s1053_s18, %s1331_s18   ;;  %s1009_s17 = sphi %s1051_s17, %s1330_s17   ;;  %s1005_s16 = sphi %s1049_s16, %s1329_s16   ;;  %s1001_s15 = sphi %s1047_s15, %s1328_s15  }
   0x7   : > { %p41_p0 = scmp.ne.s32.totalorder %s1005_s16, %s1001_s15  ;;  %p1310_p1 = scmp.eq.s32.totalorder %s1068_s19, 0 }
   0x8   : > { %p134_p3 = scmp.eq.s32.totalorder %s658_s20, 1  ;;  %p659_p5 = scmp.ge.s32.totalorder %s1013_s18, 1 }
   0x9   : > { %p1077_p4 = por %p1310_p1, %p41_p0  ;;  %p141_p7 = scmp.lt.s32.totalorder %s1013_s18, 3 }
   0xa   : > { %p1082_p6 = por %p134_p3, %p41_p0  ;;  %s1015_s24 = smov [#allocation5]  }
   0xb   : > { %s1314_s21 = scalar_select %p1077_p4, 1, 0 }
   0xc   : > { %s1315_s22 = scalar_select %p1082_p6, 1, 0 }
   0xd   : > { %p1087_p8 = pnand %p659_p5, %p141_p7  ;;  %s159_s25 = sshll.u32 %s1015_s24, 4  ;;  %s160_s25 = int_to_ptr.vmem [resolvable:$true] %s159_s25 }
   0xe   : > { %s1101_s27 = sadd.s32 1, %s1013_s18   ;;  %s28_s28 = sadd.s32 1, %s1009_s17 }
   0xf   : > { %s1316_s23 = scalar_select %p1087_p8, 1, 0 }
  0x10   : > { %p822_p9 = pneg %p1087_p8  ;;  %s25_s29 = ssub.s32 %s1013_s18, %s1101_s27 }
  0x11   : > { %s902_s30 = scalar_lea.vmem %s160_s25, 2048  ;;  %p910_p5 = scmp.lt.s32.totalorder %s160_s25, %s160_s25 }
  0x12   : > { %p1096_p11 = pnand %p822_p9, %p1310_p1  ;;  %p903_p13 = scmp.ne.s32.totalorder %s160_s25, %s902_s30 }
  0x13   : > { %p911_p7 = scmp.lt.s32.totalorder %s902_s30, %s902_s30 }
  0x14   : > { %p893_p12 = pneg %p1096_p11 }
  0x15   : > { %p912_p10 = por %p911_p7, %p910_p5 }
  0x16   : > { %p905_p0 = pnand %p903_p13, %p893_p12 }
  0x18   : > { %p906_p3 = pneg %p905_p0 }
  0x1a   : > { %p913_p2 = pnand %p912_p10, %p906_p3 }
  0x1c   : > { %916 = shalt.err (!%p913_p2)
}
  0x1d   : > { %s1016_s5 = smov 128   ;;  %s1017_s6 = smov 8  }
  0x1e   : > { %825 = dma.hbm_to_vmem [thread:$0]  (!%p1096_p11), %s1308_s3, 2048, %s160_s25, [#allocation6], %s1016_s5, %s1016_s5, %s1017_s6  }
  0x1f   : > { %p26_p2 = scmp.eq.s32.totalorder %s25_s29, 0  ;;  %p35_p9 = scmp.ne.s32.totalorder %s1009_s17, %s1005_s16 }
  0x20   : > { %p36_p10 = scmp.eq.s32.totalorder %s1013_s18, 0  ;;  %p835_p12 = scmp.lt.s32.totalorder %s1013_s18, 2 }
  0x21   : > { %s1121_s9 = scalar_select %p26_p2, %s1009_s17, %s28_s28  }
  0x22   : > { %p37_p13 = por %p36_p10, %p35_p9  ;;  %p1318_p0 = scmp.eq.s32.totalorder %s1068_s19, 1 }
  0x23   : > { %s173_s11 = sand.u32 1, %s1009_s17   ;;  %s676_s12 = sshll.u32 %s1013_s18, 10 }
  0x24   : > { %p1125_p3 = por %p1318_p0, %p35_p9  ;;  %s662_s13 = sshll.u32 %s173_s11, 6 }
  0x25   : > { %s1134_s24 = scalar_lea.hbm %s1305_s0, %s676_s12  ;;  %s177_s25 = scalar_lea.vmem [#allocation2], %s662_s13 }
  0x26   : > { %s1319_s10 = scalar_select %p1125_p3, 1, 0 }
  0x27   : > { %s184_s26 = sshll.u32 %s177_s25, 4  ;;  %p1136_p11 = pnand %p835_p12, %p37_p13  ;;  %s1140_s26 = int_to_ptr.vmem [resolvable:$true] %s184_s26 }
  0x28   : > { %s1142_s29 = scalar_lea.sflag [#allocation3], %s173_s11  ;;  %s917_s30 = scalar_lea.hbm %s1134_s24, 1024 }
  0x29   : > { %p918_p5 = scmp.ne.s32.totalorder %s1134_s24, %s917_s30  ;;  %p919_p7 = pneg %p1136_p11 }
  0x2a   : > { %s922_s12 = scalar_lea.hbm %s1305_s0, 2048  ;;  %p923_p10 = scmp.lt.s32.totalorder %s1134_s24, %s1305_s0 }
  0x2b   : > { %p920_p2 = pnand %p919_p7, %p918_p5  ;;  %p924_p12 = scmp.lt.s32.totalorder %s922_s12, %s917_s30 }
  0x2d   : > { %p921_p9 = pneg %p920_p2  ;;  %p925_p13 = por %p924_p12, %p923_p10 }
  0x2f   : > { %p926_p0 = pnand %p925_p13, %p921_p9 }
  0x31   : > { %929 = shalt.err (!%p926_p0)
}
  0x32   : > { %s930_s11 = scalar_lea.vmem %s1140_s26, 1024  ;;  %s1018_s20 = smov [#allocation2]  }
  0x33   : > { %p931_p1 = scmp.ne.s32.totalorder %s1140_s26, %s930_s11  ;;  %s935_s25 = sshll.u32 %s1018_s20, 4  ;;  %s936_s25 = int_to_ptr.vmem [resolvable:$false] %s935_s25 }
  0x34   : > { %s937_s7 = scalar_lea.vmem %s936_s25, 2048  ;;  %p938_p2 = scmp.lt.s32.totalorder %s1140_s26, %s936_s25 }
  0x35   : > { %p933_p6 = pnand %p931_p1, %p919_p7  ;;  %p939_p3 = scmp.lt.s32.totalorder %s937_s7, %s930_s11 }
  0x37   : > { %p934_p5 = pneg %p933_p6  ;;  %p940_p4 = por %p939_p3, %p938_p2 }
  0x39   : > { %p941_p8 = pnand %p940_p4, %p934_p5 }
  0x3b   : > { %944 = shalt.err (!%p941_p8)
}
  0x3c   : > { %829 = dma.hbm_to_vmem [thread:$0]  (!%p1136_p11), %s1134_s24, 1024, %s1140_s26, %s1142_s29, %s1016_s5, %s1016_s5, %s1017_s6  }
  0x3d   : > { %p1321_p1 = scmp.ne.s32.totalorder %s1316_s23, 0 }
  0x3e   : > { %s1169_s30 = sand.u32 (!%p1321_p1), 1, %s1005_s16   ;;  %p1322_p4 = scmp.ne.s32.totalorder (!%p1321_p1), %s1314_s21, 0 }
  0x3f   : > { %196 = sbr.rel (%p1321_p1) target bundleno = 552 (0x228), region = 36  ;;  %s666_s8 = sshll.u32 (!%p1321_p1), %s1169_s30, 6 }
  0x40   : > { %s199_s12 = scalar_lea.sflag (!%p1321_p1), [#allocation3], %s1169_s30  ;;  %s1175_s28 = scalar_lea.vmem (!%p1321_p1), [#allocation2], %s666_s8 }
  0x44   : > { %988 = dma.done.wait (%p1322_p4), %s199_s12, 1024  }
  0x45   : > { %990 = vsyncadd (%p1322_p4), %s199_s12, 4294966272  ;;  %p1323_p6 = scmp.eq.s32.totalorder %s1068_s19, 0 }
  0x47   : > { %992 = dma.done.wait (%p1323_p6), [#allocation6], 2048   ;;  %p1324_p8 = pmov %p1323_p6 }
  0x48   : > { %v256_v0 = vld [vmem:[#allocation5 + $0x78] sm:$0xff]  ;;  %v255_v1 = vld [vmem:[#allocation5 + $0x70] sm:$0xff]  ;;  %v254_v2 = vld [vmem:[#allocation5 + $0x68] sm:$0xff]  ;;  %s1240_s24 = scalar_lea.vmem [#allocation7], %s666_s8  ;;  %s677_s26 = sshll.u32 %s1068_s19, 10 }
  0x49   : > { %994 = vsyncadd (%p1324_p8), [#allocation6], 4294965248  ;;  %726 = vmatprep.subr.mxu0 %v256_v0  ;;  %770 = vmatprep.subr.mxu1 %v256_v0  ;;  %v253_v3 = vld [vmem:[#allocation5 + $0x60] sm:$0xff]  ;;  %v252_v5 = vld [vmem:[#allocation5 + $0x58] sm:$0xff]  ;;  %s575_s29 = sshll.u32 %s1240_s24, 4  ;;  %s1258_s11 = scalar_lea.hbm %s1309_s4, %s677_s26  ;;  %s1260_s29 = int_to_ptr.vmem [resolvable:$true] %s575_s29 }
  0x4a   : > { %727 = vmatpush3.msra.mxu0 %v256_v0  ;;  %771 = vmatpush3.msra.mxu1 %v256_v0  ;;  %v1186_v4 = vld [vmem:[%s1175_s28] sm:$0xff]  ;;  %v251_v6 = vld [vmem:[#allocation5 + $0x50] sm:$0xff]  ;;  %v250_v7 = vld [vmem:[#allocation5 + $0x48] sm:$0xff]  ;;  %s562_s20 = scalar_lea.sflag [#allocation4], %s1169_s30  ;;  %s945_s25 = scalar_lea.vmem %s1260_s29, 1024 }
  0x4b   : > { %728 = vmatprep.subr.mxu0 %v255_v1  ;;  %772 = vmatprep.subr.mxu1 %v255_v1  ;;  %v249_v8 = vld [vmem:[#allocation5 + $0x40] sm:$0xff]  ;;  %v248_v9 = vld [vmem:[#allocation5 + $0x38] sm:$0xff]  ;;  %v247_v10 = vld [vmem:[#allocation5 + $0x30] sm:$0xff]  ;;  %p946_p3 = scmp.ne.s32.totalorder %s1260_s29, %s945_s25  ;;  %p1325_p11 = scmp.ne.s32.totalorder %s1319_s10, 0 }
  0x4c   : > { %729 = vmatpush3.msra.mxu0 %v255_v1  ;;  %773 = vmatpush3.msra.mxu1 %v255_v1  ;;  %v246_v11 = vld [vmem:[#allocation5 + $0x28] sm:$0xff]  ;;  %v245_v12 = vld [vmem:[#allocation5 + $0x20] sm:$0xff]  ;;  %v244_v13 = vld [vmem:[#allocation5 + $0x18] sm:$0xff]  ;;  %s1019_s19 = smov [#allocation7]  }
  0x4d   : > { %730 = vmatprep.subr.mxu0 %v254_v2  ;;  %774 = vmatprep.subr.mxu1 %v254_v2  ;;  %v243_v14 = vld [vmem:[#allocation5 + $0x10] sm:$0xff]  ;;  %v242_v15 = vld [vmem:[#allocation5 + $0x8] sm:$0xff]  ;;  %v241_v16 = vld [vmem:[#allocation5] sm:$0xff]  ;;  %p947_p7 = pnand %p946_p3, %p1325_p11  ;;  %s949_s7 = sshll.u32 %s1019_s19, 4  ;;  %s950_s7 = int_to_ptr.vmem [resolvable:$false] %s949_s7 }
  0x4e   : > { %731 = vmatpush3.msra.mxu0 %v254_v2  ;;  %758 = vmatprep.mubr.f32.mxu0 %v1186_v4  ;;  %v234_v17 = vld [vmem:[%s1175_s28 + $0x8] sm:$0xff]  ;;  %v235_v18 = vld [vmem:[%s1175_s28 + $0x10] sm:$0xff]  ;;  %v236_v19 = vld [vmem:[%s1175_s28 + $0x18] sm:$0xff]  ;;  %s951_s8 = scalar_lea.vmem %s950_s7, 2048  ;;  %p952_p10 = scmp.lt.s32.totalorder %s1260_s29, %s950_s7 }
  0x4f   : > { %732 = vmatprep.subr.mxu0 %v253_v3  ;;  %775 = vmatpush3.msra.mxu1 %v254_v2  ;;  %v237_v20 = vld [vmem:[%s1175_s28 + $0x20] sm:$0xff]  ;;  %v238_v21 = vld [vmem:[%s1175_s28 + $0x28] sm:$0xff]  ;;  %v239_v22 = vld [vmem:[%s1175_s28 + $0x30] sm:$0xff]  ;;  %p948_p9 = pneg %p947_p7  ;;  %p953_p12 = scmp.lt.s32.totalorder %s951_s8, %s945_s25 }
  0x50   : > { %733 = vmatpush3.msra.mxu0 %v253_v3  ;;  %776 = vmatprep.subr.mxu1 %v253_v3  ;;  %v240_v23 = vld [vmem:[%s1175_s28 + $0x38] sm:$0xff] }
  0x51   : > { %734 = vmatprep.subr.mxu0 %v252_v5  ;;  %777 = vmatpush3.msra.mxu1 %v253_v3  ;;  %p954_p13 = por %p953_p12, %p952_p10 }
  0x52   : > { %735 = vmatpush3.msra.mxu0 %v252_v5  ;;  %778 = vmatprep.subr.mxu1 %v252_v5 }
  0x53   : > { %736 = vmatprep.subr.mxu0 %v251_v6  ;;  %779 = vmatpush3.msra.mxu1 %v252_v5  ;;  %p955_p0 = pnand %p954_p13, %p948_p9 }
  0x54   : > { %737 = vmatpush3.msra.mxu0 %v251_v6  ;;  %780 = vmatprep.subr.mxu1 %v251_v6 }
  0x55   : > { %738 = vmatprep.subr.mxu0 %v250_v7  ;;  %781 = vmatpush3.msra.mxu1 %v251_v6 }
  0x56   : > { %739 = vmatpush3.msra.mxu0 %v250_v7  ;;  %782 = vmatprep.subr.mxu1 %v250_v7 }
  0x57   : > { %740 = vmatprep.subr.mxu0 %v249_v8  ;;  %783 = vmatpush3.msra.mxu1 %v250_v7 }
  0x58   : > { %741 = vmatpush3.msra.mxu0 %v249_v8  ;;  %784 = vmatprep.subr.mxu1 %v249_v8 }
  0x59   : > { %742 = vmatprep.subr.mxu0 %v248_v9  ;;  %785 = vmatpush3.msra.mxu1 %v249_v8 }
  0x5a   : > { %743 = vmatpush3.msra.mxu0 %v248_v9  ;;  %786 = vmatprep.subr.mxu1 %v248_v9 }
  0x5b   : > { %744 = vmatprep.subr.mxu0 %v247_v10  ;;  %787 = vmatpush3.msra.mxu1 %v248_v9 }
  0x5c   : > { %745 = vmatpush3.msra.mxu0 %v247_v10  ;;  %788 = vmatprep.subr.mxu1 %v247_v10 }
  0x5d   : > { %746 = vmatprep.subr.mxu0 %v246_v11  ;;  %789 = vmatpush3.msra.mxu1 %v247_v10 }
  0x5e   : > { %747 = vmatpush3.msra.mxu0 %v246_v11  ;;  %790 = vmatprep.subr.mxu1 %v246_v11 }
  0x5f   : > { %748 = vmatprep.subr.mxu0 %v245_v12  ;;  %791 = vmatpush3.msra.mxu1 %v246_v11 }
  0x60   : > { %749 = vmatpush3.msra.mxu0 %v245_v12  ;;  %792 = vmatprep.subr.mxu1 %v245_v12 }
  0x61   : > { %750 = vmatprep.subr.mxu0 %v244_v13  ;;  %793 = vmatpush3.msra.mxu1 %v245_v12 }
  0x62   : > { %751 = vmatpush3.msra.mxu0 %v244_v13  ;;  %794 = vmatprep.subr.mxu1 %v244_v13 }
  0x63   : > { %752 = vmatprep.subr.mxu0 %v243_v14  ;;  %795 = vmatpush3.msra.mxu1 %v244_v13 }
  0x64   : > { %753 = vmatpush3.msra.mxu0 %v243_v14  ;;  %796 = vmatprep.subr.mxu1 %v243_v14 }
  0x65   : > { %754 = vmatprep.subr.mxu0 %v242_v15  ;;  %797 = vmatpush3.msra.mxu1 %v243_v14 }
  0x66   : > { %755 = vmatpush3.msra.mxu0 %v242_v15  ;;  %798 = vmatprep.subr.mxu1 %v242_v15 }
  0x67   : > { %756 = vmatprep.subr.mxu0 %v241_v16  ;;  %799 = vmatpush3.msra.mxu1 %v242_v15 }
  0x68   : > { %757 = vmatpush3.msra.mxu0 %v241_v16  ;;  %800 = vmatprep.subr.mxu1 %v241_v16 }
  0x69   : > { %759 = vmatmul.mubr.f32.vlgmr.msra.gmra.mxu0 %v234_v17  ;;  %801 = vmatpush3.msra.mxu1 %v241_v16 }
  0x6a   : > { %761 = vmatprep.mubr.f32.mxu0 %v235_v18 }
  0x6d   : > { %762 = vmatmul.mubr.f32.gmra.mxu0 %v236_v19 }
  0x6e   : > { %764 = vmatprep.mubr.f32.mxu0 %v237_v20 }
  0x71   : > { %765 = vmatmul.mubr.f32.gmra.mxu0 %v238_v21 }
  0x72   : > { %767 = vmatprep.mubr.f32.mxu0 %v239_v22 }
  0x75   : > { %768 = vmatmul.mubr.f32.gmra.mxu0 %v240_v23 }
 0x129   : > { %v760_v24 = vpop.f32.mrf.mxu0 }
 0x12a   : > { %v363_v25 = vmul.f32 0.03125, %v760_v24 }
 0x12b   : > { %v323_v26 = vpop.f32.mrf.mxu0 }
 0x12c   : > { %v362_v27 = vmul.f32 0.03125, %v323_v26  ;;  %v1196_v28 = vsub.f32 %v234_v17, %v363_v25  ;;  %v669_v17 = vld [vmem:[%s1306_s1] ss:$0 sm:$0xff] }
 0x12d   : > { %v763_v29 = vpop.f32.mrf.mxu0 }
 0x12e   : > { %v365_v30 = vmul.f32 0.03125, %v763_v29  ;;  %v1199_v31 = vsub.f32 %v1186_v4, %v362_v27  ;;  %v379_v37 = vmul.f32 %v1196_v28, %v1196_v28 }
 0x12f   : > { %v333_v32 = vpop.f32.mrf.mxu0 }
 0x130   : > { %v364_v33 = vmul.f32 0.03125, %v333_v32  ;;  %v378_v34 = vmul.f32 %v1199_v31, %v1199_v31  ;;  %v1203_v35 = vsub.f32 %v236_v19, %v365_v30 }
 0x131   : > { %v766_v36 = vpop.f32.mrf.mxu0 }
 0x132   : > { %v1207_v38 = vsub.f32 %v235_v18, %v364_v33  ;;  %v367_v39 = vmul.f32 0.03125, %v766_v36  ;;  %802 = vmatprep.mubr.f32.mxu1 %v378_v34  ;;  %v381_v45 = vmul.f32 %v1203_v35, %v1203_v35 }
 0x133   : > { %v343_v40 = vpop.f32.mrf.mxu0  ;;  %803 = vmatmul.mubr.f32.vlgmr.msra.gmra.mxu1 %v379_v37 }
 0x134   : > { %v366_v41 = vmul.f32 0.03125, %v343_v40  ;;  %v380_v42 = vmul.f32 %v1207_v38, %v1207_v38  ;;  %v1211_v43 = vsub.f32 %v238_v21, %v367_v39 }
 0x135   : > { %v769_v44 = vpop.f32.mrf.mxu0 }
 0x136   : > { %v1215_v46 = vsub.f32 %v237_v20, %v366_v41  ;;  %v369_v47 = vmul.f32 0.03125, %v769_v44  ;;  %805 = vmatprep.mubr.f32.mxu1 %v380_v42  ;;  %v383_v52 = vmul.f32 %v1211_v43, %v1211_v43  ;;  %v670_v20 = vld [vmem:[%s1307_s2] ss:$0 sm:$0xff] }
 0x137   : > { %v353_v48 = vpop.f32.mrf.mxu0  ;;  %806 = vmatmul.mubr.f32.gmra.mxu1 %v381_v45 }
 0x138   : > { %v368_v49 = vmul.f32 0.03125, %v353_v48  ;;  %v382_v50 = vmul.f32 %v1215_v46, %v1215_v46  ;;  %v1219_v51 = vsub.f32 %v240_v23, %v369_v47 }
 0x13a   : > { %v1223_v53 = vsub.f32 %v239_v22, %v368_v49  ;;  %808 = vmatprep.mubr.f32.mxu1 %v382_v50  ;;  %v385_v55 = vmul.f32 %v1219_v51, %v1219_v51 }
 0x13b   : > { %809 = vmatmul.mubr.f32.gmra.mxu1 %v383_v52 }
 0x13c   : > { %v384_v54 = vmul.f32 %v1223_v53, %v1223_v53 }
 0x13e   : > { %811 = vmatprep.mubr.f32.mxu1 %v384_v54 }
 0x13f   : > { %812 = vmatmul.mubr.f32.gmra.mxu1 %v385_v55 }
 0x1f3   : > { %v804_v56 = vpop.f32.mrf.mxu1 }
 0x1f4   : > { %v492_v57 = vmul.f32 0.03125, %v804_v56 }
 0x1f5   : > { %v452_v58 = vpop.f32.mrf.mxu1 }
 0x1f6   : > { %v500_v59 = vadd.f32 1e-06, %v492_v57  ;;  %v491_v60 = vmul.f32 0.03125, %v452_v58 }
 0x1f7   : > { %v807_v61 = vpop.f32.mrf.mxu1 }
 0x1f8   : > { %875 = vrsqrt.f32 %v500_v59  ;;  %v499_v62 = vadd.f32 1e-06, %v491_v60  ;;  %v494_v63 = vmul.f32 0.03125, %v807_v61 }
 0x1f9   : > { %v462_v0 = vpop.f32.mrf.mxu1 }
 0x1fa   : > { %877 = vrsqrt.f32 %v499_v62  ;;  %v502_v1 = vadd.f32 1e-06, %v494_v63  ;;  %v493_v2 = vmul.f32 0.03125, %v462_v0 }
 0x1fb   : > { %v810_v3 = vpop.f32.mrf.mxu1 }
 0x1fc   : > { %879 = vrsqrt.f32 %v502_v1  ;;  %v501_v4 = vadd.f32 1e-06, %v493_v2  ;;  %v496_v5 = vmul.f32 0.03125, %v810_v3 }
 0x1fd   : > { %v472_v6 = vpop.f32.mrf.mxu1 }
 0x1fe   : > { %881 = vrsqrt.f32 %v501_v4  ;;  %v504_v7 = vadd.f32 1e-06, %v496_v5  ;;  %v495_v8 = vmul.f32 0.03125, %v472_v6 }
 0x1ff   : > { %v813_v9 = vpop.f32.mrf.mxu1 }
 0x200   : > { %883 = vrsqrt.f32 %v504_v7  ;;  %v503_v10 = vadd.f32 1e-06, %v495_v8  ;;  %v498_v11 = vmul.f32 0.03125, %v813_v9 }
 0x201   : > { %v482_v12 = vpop.f32.mrf.mxu1 }
 0x202   : > { %885 = vrsqrt.f32 %v503_v10  ;;  %v506_v13 = vadd.f32 1e-06, %v498_v11  ;;  %v497_v14 = vmul.f32 0.03125, %v482_v12 }
 0x204   : > { %887 = vrsqrt.f32 %v506_v13  ;;  %v505_v15 = vadd.f32 1e-06, %v497_v14 }
 0x205   : > { %v876_v16 = vpop.eup %875 }
 0x206   : > { %v516_v18 = vmul.f32 %v876_v16, %v1196_v28  ;;  %889 = vrsqrt.f32 %v505_v15 }
 0x207   : > { %v878_v19 = vpop.eup %877 }
 0x208   : > { %v532_v21 = vmul.f32 %v669_v17, %v516_v18  ;;  %v515_v22 = vmul.f32 %v878_v19, %v1199_v31 }
 0x209   : > { %v880_v23 = vpop.eup %879 }
 0x20a   : > { %v546_v24 = vadd.f32 %v670_v20, %v532_v21  ;;  %v531_v25 = vmul.f32 %v669_v17, %v515_v22  ;;  %v518_v26 = vmul.f32 %v880_v23, %v1203_v35 }
 0x20b   : > { %v882_v27 = vpop.eup %881 }
 0x20c   : > { %554 = vst [vmem:[%s1240_s24 + $0x8] sm:$0xff] %v546_v24  ;;  %v545_v28 = vadd.f32 %v670_v20, %v531_v25  ;;  %v534_v29 = vmul.f32 %v669_v17, %v518_v26  ;;  %v517_v30 = vmul.f32 %v882_v27, %v1207_v38 }
 0x20d   : > { %v884_v32 = vpop.eup %883 }
 0x20e   : > { %553 = vst [vmem:[%s1240_s24] sm:$0xff] %v545_v28  ;;  %v548_v31 = vadd.f32 %v670_v20, %v534_v29  ;;  %v533_v33 = vmul.f32 %v669_v17, %v517_v30  ;;  %v520_v34 = vmul.f32 %v884_v32, %v1211_v43 }
 0x20f   : > { %v886_v35 = vpop.eup %885 }
 0x210   : > { %556 = vst [vmem:[%s1240_s24 + $0x18] sm:$0xff] %v548_v31  ;;  %v547_v36 = vadd.f32 %v670_v20, %v533_v33  ;;  %v536_v37 = vmul.f32 %v669_v17, %v520_v34  ;;  %v519_v39 = vmul.f32 %v886_v35, %v1215_v46 }
 0x211   : > { %v888_v40 = vpop.eup %887 }
 0x212   : > { %555 = vst [vmem:[%s1240_s24 + $0x10] sm:$0xff] %v547_v36  ;;  %v550_v38 = vadd.f32 %v670_v20, %v536_v37  ;;  %v535_v41 = vmul.f32 %v669_v17, %v519_v39  ;;  %v522_v42 = vmul.f32 %v888_v40, %v1219_v51 }
 0x213   : > { %v890_v44 = vpop.eup %889 }
 0x214   : > { %558 = vst [vmem:[%s1240_s24 + $0x28] sm:$0xff] %v550_v38  ;;  %v549_v43 = vadd.f32 %v670_v20, %v535_v41  ;;  %v538_v45 = vmul.f32 %v669_v17, %v522_v42  ;;  %v521_v47 = vmul.f32 %v890_v44, %v1223_v53 }
 0x216   : > { %557 = vst [vmem:[%s1240_s24 + $0x20] sm:$0xff] %v549_v43  ;;  %v552_v46 = vadd.f32 %v670_v20, %v538_v45  ;;  %v537_v48 = vmul.f32 %v669_v17, %v521_v47 }
 0x218   : > { %560 = vst [vmem:[%s1240_s24 + $0x38] sm:$0xff] %v552_v46  ;;  %v551_v49 = vadd.f32 %v670_v20, %v537_v48 }
 0x21a   : > { %559 = vst [vmem:[%s1240_s24 + $0x30] sm:$0xff] %v551_v49 }
 0x21b   : > { %958 = shalt.err (!%p955_p0)
}
 0x21c   : > { %s959_s12 = scalar_lea.hbm %s1258_s11, 1024  ;;  %s963_s23 = scalar_lea.hbm %s1309_s4, 2048 }
 0x21d   : > { %p960_p5 = scmp.ne.s32.totalorder %s1258_s11, %s959_s12  ;;  %p964_p4 = scmp.lt.s32.totalorder %s1258_s11, %s1309_s4 }
 0x21e   : > { %p965_p6 = scmp.lt.s32.totalorder %s963_s23, %s959_s12 }
 0x21f   : > { %p961_p2 = pnand %p960_p5, %p1325_p11 }
 0x220   : > { %p966_p8 = por %p965_p6, %p964_p4 }
 0x221   : > { %p962_p1 = pneg %p961_p2 }
 0x223   : > { %p967_p3 = pnand %p966_p8, %p962_p1 }
 0x225   : > { %970 = shalt.err (!%p967_p3)
}
 0x226   : > { %s1020_s24 = smov 128   ;;  %s1021_s26 = smov 8  }
 0x227   : > { %820 = dma.vmem_to_hbm [thread:$0]  (%p1325_p11), %s1260_s29, 1024, %s1258_s11, %s562_s20, %s1020_s24, %s1020_s24, %s1021_s26  }
 0x228 PF: > { %s590_s13 = sand.u32 1, %s1001_s15   ;;  %p1326_p7 = scmp.ne.s32.totalorder %s1315_s22, 0 }
 0x229   : > { %p1327_p9 = scmp.ge.s32.totalorder %s1013_s18, 2  ;;  %s591_s14 = scalar_lea.sflag [#allocation4], %s590_s13 }
 0x22b   : > { %p831_p10 = pnand %p1327_p9, %p1326_p7 }
 0x22d   : > { %p832_p12 = pneg %p831_p10 }
 0x22f   : > { %996 = dma.done.wait (%p832_p12), %s591_s14, 1024  }
 0x230   : > { %998 = vsyncadd (%p832_p12), %s591_s14, 4294966272  ;;  %p18_p13 = scmp.ge.s32.totalorder %s1101_s27, 4   ;;  %s1328_s15 = smov %s1005_s16 }
 0x231   : > { %s1329_s16 = smov %s1009_s17  ;;  %s1330_s17 = smov %s1121_s9 }
 0x232   : > { %s1331_s18 = smov %s1101_s27  ;;  %20 = sbr.rel (!%p18_p13) target bundleno = 6 (0x6), region = 85 }
 0x237   :  { %596 = vsyncpa [#allocation3], 1 }
 0x238   :  { %598 = vsyncpa [#allocation3 + $0x1], 1 }
 0x239   :  { %599 = vsyncpa [#allocation6], 1 }
 0x23a   :  { %600 = vsyncpa [#allocation4], 1 }
 0x23b   :  { %602 = vsyncpa [#allocation4 + $0x1], 1 }

</bundles_post_ra>
